<compile_context>
chip_gen: v6e
topology: v6e:2x2x1
jax: 0.10.0
libtpu: 0.0.40
codegen_flags: <defaults>
</compile_context>

<pallas_src>
import jax
import jax.numpy as jnp
from jax.experimental import pallas as pl
from jax.experimental.pallas import tpu as pltpu


def _round_up(x: int, m: int) -> int:
    return (x + m - 1) // m * m


def _min_value(dtype):
    dtype = jnp.dtype(dtype)
    if jnp.issubdtype(dtype, jnp.floating):
        return float("-inf")
    return int(jnp.iinfo(dtype).min)


def _max_readout_kernel(x_ref, o_ref, acc_ref):
    # x_ref: (block_b, block_n, D_pad) input tile
    # o_ref: (block_b, D_pad) output tile (resident across the N grid axis)
    # acc_ref: (block_b, D_pad) accumulator scratch (f32 for float inputs)
    k = pl.program_id(1)

    @pl.when(k == 0)
    def _init():
        acc_ref[...] = jnp.full(acc_ref.shape, _min_value(acc_ref.dtype),
                                dtype=acc_ref.dtype)

    # Cross-sublane reduce of this N tile (XLU), then running combine (VPU).
    tile_max = jnp.max(x_ref[...].astype(acc_ref.dtype), axis=1)
    acc_ref[...] = jnp.maximum(acc_ref[...], tile_max)

    @pl.when(k == pl.num_programs(1) - 1)
    def _finalize():
        o_ref[...] = acc_ref[...].astype(o_ref.dtype)


def max_readout(seq: jax.Array, *, block_b: int = 8,
                target_block_bytes: int = 4 << 20) -> jax.Array:
    """Pallas TPU equivalent of torch.max(seq, 1).values for seq of shape (B, N, D)."""
    B, N, D = seq.shape
    assert N > 0, "reduction axis (dim 1) must be non-empty"
    dtype = seq.dtype
    itemsize = jnp.dtype(dtype).itemsize

    acc_dtype = jnp.float32 if jnp.issubdtype(dtype, jnp.floating) else dtype
    pad_val = _min_value(dtype)  # identity for max -> padding never wins

    # Lane-dense feature axis, sublane-dense batch block.
    D_pad = _round_up(D, 128)
    B_pad = _round_up(B, block_b)

    # Size the N tile so one input block is ~target_block_bytes (multiple of 8
    # sublanes), but never larger than the (padded) N extent.
    bytes_per_n_row = block_b * D_pad * itemsize
    block_n = max(8, (target_block_bytes // bytes_per_n_row) // 8 * 8)
    block_n = min(block_n, _round_up(N, 8))
    N_pad = _round_up(N, block_n)

    x = seq
    if (B_pad, N_pad, D_pad) != (B, N, D):
        x = jnp.pad(
            x,
            ((0, B_pad - B), (0, N_pad - N), (0, D_pad - D)),
            mode="constant",
            constant_values=pad_val,
        )

    grid = (B_pad // block_b, N_pad // block_n)

    in_block_bytes = block_b * block_n * D_pad * itemsize
    out_block_bytes = block_b * D_pad * itemsize
    acc_bytes = block_b * D_pad * jnp.dtype(acc_dtype).itemsize
    # Double-buffered in/out blocks + accumulator, 2x headroom; stay well under
    # the v7x 64 MiB physical VMEM.
    vmem_needed = 2 * in_block_bytes + 2 * out_block_bytes + acc_bytes
    vmem_limit = int(min(max(2 * vmem_needed, 16 << 20), 48 << 20))

    cost = pl.CostEstimate(
        flops=B_pad * N_pad * D_pad,                       # one compare per element
        transcendentals=0,
        bytes_accessed=B_pad * N_pad * D_pad * itemsize + B_pad * D_pad * itemsize,
    )

    out_padded = pl.pallas_call(
        _max_readout_kernel,
        out_shape=jax.ShapeDtypeStruct((B_pad, D_pad), dtype),
        grid_spec=pltpu.PrefetchScalarGridSpec(
            num_scalar_prefetch=0,
            grid=grid,
            in_specs=[
                pl.BlockSpec((block_b, block_n, D_pad), lambda b, k: (b, k, 0)),
            ],
            out_specs=pl.BlockSpec((block_b, D_pad), lambda b, k: (b, 0)),
            scratch_shapes=[pltpu.VMEM((block_b, D_pad), acc_dtype)],
        ),
        compiler_params=pltpu.CompilerParams(
            dimension_semantics=("parallel", "arbitrary"),
            vmem_limit_bytes=vmem_limit,
        ),
        cost_estimate=cost,
    )(x)

    return out_padded[:B, :D]


if __name__ == "__main__":
    key = jax.random.PRNGKey(0)
    B, N, D = 2, 8, 32  # small shapes: batch=2, seq=8, hidden=32
    seq = jax.random.normal(key, (B, N, D), dtype=jnp.float32)

    out = max_readout(seq)
    jax.block_until_ready(out)

    # Cross-check vs plain JAX (same semantics as torch.max(seq, 1).values).
    ref = jnp.max(seq, axis=1)
    assert out.shape == (B, D)
    assert out.dtype == seq.dtype
    assert jnp.allclose(out, ref), "mismatch vs reference"

    # Second check at a shape that exercises N-tiling / multi-block batch.
    key2 = jax.random.PRNGKey(1)
    seq2 = jax.random.normal(key2, (10, 300, 200), dtype=jnp.float32)
    out2 = max_readout(seq2, target_block_bytes=1 << 20)
    jax.block_until_ready(out2)
    assert jnp.allclose(out2, jnp.max(seq2, axis=1)), "mismatch vs reference (tiled)"

    print("KERNEL_OK")
</pallas_src>

<mosaic_0001>
module attributes {stable_mosaic.version = 11 : i64} {
  func.func @_max_readout_kernel(%arg0: i32, %arg1: i32, %arg2: memref<8x8x128xf32, #tpu.memory_space<vmem>>, %arg3: memref<8x128xf32, #tpu.memory_space<vmem>>, %arg4: memref<8x128xf32, #tpu.memory_space<vmem>>) attributes {dimension_semantics = [#tpu.dimension_semantics<parallel>, #tpu.dimension_semantics<arbitrary>], iteration_bounds = array<i64: 1, 1>, scalar_prefetch = 0 : i64, scratch_operands = 1 : i64, tpu.core_type = #tpu.core_type<tc>, window_params = [{transform_indices = @transform_0, window_bounds = array<i64: 8, 8, 128>}, {transform_indices = @transform_1, window_bounds = array<i64: 8, 128>}]} {
    %c0_i32 = arith.constant 0 : i32
    %0 = arith.cmpi eq, %arg1, %c0_i32 : i32
    %1 = arith.extui %0 : i1 to i32
    %c0_i32_0 = arith.constant 0 : i32
    %2 = arith.cmpi ne, %1, %c0_i32_0 : i32
    scf.if %2 {
      %cst_9 = arith.constant 0xFF800000 : f32
      %11 = vector.broadcast %cst_9 : f32 to vector<8x128xf32>
      %c0_10 = arith.constant 0 : index
      %c0_11 = arith.constant 0 : index
      %12 = vector.load %arg4[%c0_10, %c0_11] : memref<8x128xf32, #tpu.memory_space<vmem>>, vector<8x128xf32>
      tpu.vector_store %arg4[%c0_10, %c0_11], %11 {strides = array<i32>} : memref<8x128xf32, #tpu.memory_space<vmem>>, vector<8x128xf32>,
    } else {
    }
    %c0 = arith.constant 0 : index
    %c0_1 = arith.constant 0 : index
    %c0_2 = arith.constant 0 : index
    %3 = vector.load %arg2[%c0, %c0_1, %c0_2] : memref<8x8x128xf32, #tpu.memory_space<vmem>>, vector<8x8x128xf32>
    %cst = arith.constant dense<0xFF800000> : vector<8x128xf32>
    %4 = vector.multi_reduction <maximumf>, %3, %cst [1] : vector<8x8x128xf32> to vector<8x128xf32>
    %c0_3 = arith.constant 0 : index
    %c0_4 = arith.constant 0 : index
    %5 = vector.load %arg4[%c0_3, %c0_4] : memref<8x128xf32, #tpu.memory_space<vmem>>, vector<8x128xf32>
    %6 = arith.maximumf %5, %4 : vector<8x128xf32>
    %c0_5 = arith.constant 0 : index
    %c0_6 = arith.constant 0 : index
    %7 = vector.load %arg4[%c0_5, %c0_6] : memref<8x128xf32, #tpu.memory_space<vmem>>, vector<8x128xf32>
    tpu.vector_store %arg4[%c0_5, %c0_6], %6 {strides = array<i32>} : memref<8x128xf32, #tpu.memory_space<vmem>>, vector<8x128xf32>,
    %c0_i32_7 = arith.constant 0 : i32
    %8 = arith.cmpi eq, %arg1, %c0_i32_7 : i32
    %9 = arith.extui %8 : i1 to i32
    %c0_i32_8 = arith.constant 0 : i32
    %10 = arith.cmpi ne, %9, %c0_i32_8 : i32
    scf.if %10 {
      %c0_9 = arith.constant 0 : index
      %c0_10 = arith.constant 0 : index
      %11 = vector.load %arg4[%c0_9, %c0_10] : memref<8x128xf32, #tpu.memory_space<vmem>>, vector<8x128xf32>
      %c0_11 = arith.constant 0 : index
      %c0_12 = arith.constant 0 : index
      %12 = vector.load %arg3[%c0_11, %c0_12] : memref<8x128xf32, #tpu.memory_space<vmem>>, vector<8x128xf32>
      tpu.vector_store %arg3[%c0_11, %c0_12], %11 {strides = array<i32>} : memref<8x128xf32, #tpu.memory_space<vmem>>, vector<8x128xf32>,
    } else {
    }
    return
  }
  func.func @transform_0(%arg0: i32, %arg1: i32) -> (i32, i32, i32) {
    %c0_i32 = arith.constant 0 : i32
    %c0_i32_0 = arith.constant 0 : i32
    return %arg0, %arg1, %c0_i32 : i32, i32, i32
  }
  func.func @transform_1(%arg0: i32, %arg1: i32) -> (i32, i32) {
    %c0_i32 = arith.constant 0 : i32
    %c0_i32_0 = arith.constant 0 : i32
    return %arg0, %c0_i32 : i32, i32
  }
}

</mosaic_0001>

<bundles_post_ra>
// kernel: tpu_custom_call.1
= control target key start
LH: loop header
LB: loop body
LE: loop exit
PB: predicated region body
PF: predicated region fallthrough
CT: control target
= control target key end

     0   :  { %6 = vsyncpa [#allocation4], 0  ;;  %s200_s0 = inlined_call_operand.hbm [shape: f32[8,8,128], index: 0, kind: input, shape index: {}]   ;;  %s201_s1 = inlined_call_operand.hbm [shape: f32[8,128], index: 1, kind: output, shape index: {}]  }
   0x1   :  { %7 = vsyncpa [#allocation5], 0  ;;  %s178_s6 = smov [#allocation3]  }
   0x2   :  { %s13_s7 = sshll.u32 %s178_s6, 4  ;;  %s14_s7 = int_to_ptr.vmem [resolvable:$true] %s13_s7 }
   0x3   :  { %s142_s8 = scalar_lea.vmem %s14_s7, 1024  ;;  %p147_p1 = scmp.lt.s32.totalorder %s14_s7, %s14_s7 }
   0x4   :  { %p143_p0 = scmp.ne.s32.totalorder %s14_s7, %s142_s8  ;;  %p148_p2 = scmp.lt.s32.totalorder %s142_s8, %s142_s8 }
   0x6   :  { %p149_p3 = por %p148_p2, %p147_p1 }
   0x8   :  { %p150_p4 = pnand %p149_p3, %p143_p0 }
   0xa   :  { %153 = shalt.err (!%p150_p4)
}
   0xb   :  { %s179_s9 = smov 128   ;;  %s180_s10 = smov 8  }
   0xc   :  { %19 = dma.hbm_to_vmem [thread:$0]  %s200_s0, 1024, %s14_s7, [#allocation4], %s179_s9, %s179_s9, %s180_s10  }
   0xd   :  { %174 = dma.done.wait [#allocation4], 1024  }
   0xe   :  { %175 = vsyncadd [#allocation4], 4294966272  ;;  %v28_v0 = vld [vmem:[#allocation3] sm:$0xff]  ;;  %v29_v1 = vld [vmem:[#allocation3 + $0x8] sm:$0xff]  ;;  %vm93_vm0 = vcmask 1041409   ;;  %vm95_vm1 = vcmask 1042434  }
   0xf   :  { %v30_v2 = vld [vmem:[#allocation3 + $0x10] sm:$0xff]  ;;  %v31_v3 = vld [vmem:[#allocation3 + $0x18] sm:$0xff]  ;;  %v32_v4 = vld [vmem:[#allocation3 + $0x20] sm:$0xff]  ;;  %v36_v6 = vrot.slane %v28_v0, 4  ;;  %v42_v7 = vrot.slane %v29_v1, 4  ;;  %vm97_vm2 = vcmask 1043459  }
  0x10   :  { %v33_v5 = vld [vmem:[#allocation3 + $0x28] sm:$0xff]  ;;  %v48_v8 = vrot.slane %v30_v2, 4  ;;  %v34_v9 = vld [vmem:[#allocation3 + $0x30] sm:$0xff]  ;;  %v35_v10 = vld [vmem:[#allocation3 + $0x38] sm:$0xff]  ;;  %v54_v11 = vrot.slane %v31_v3, 4  ;;  %v60_v12 = vrot.slane %v32_v4, 4 }
  0x11   :  { %v66_v13 = vrot.slane %v33_v5, 4  ;;  %v37_v14 = vmax.f32 %v28_v0, %v36_v6  ;;  %v43_v15 = vmax.f32 %v29_v1, %v42_v7  ;;  %v72_v17 = vrot.slane %v34_v9, 4  ;;  %s181_s0 = smov [#allocation6]  }
  0x12   :  { %v49_v16 = vmax.f32 %v30_v2, %v48_v8  ;;  %v55_v18 = vmax.f32 %v31_v3, %v54_v11  ;;  %v61_v19 = vmax.f32 %v32_v4, %v60_v12  ;;  %v78_v21 = vrot.slane %v35_v10, 4  ;;  %s121_s13 = sshll.u32 %s181_s0, 4  ;;  %s122_s13 = int_to_ptr.vmem [resolvable:$true] %s121_s13 }
  0x13   :  { %v67_v20 = vmax.f32 %v33_v5, %v66_v13  ;;  %v38_v22 = vrot.slane %v37_v14, 2  ;;  %v44_v23 = vrot.slane %v43_v15, 2  ;;  %v73_v25 = vmax.f32 %v34_v9, %v72_v17  ;;  %s154_s14 = scalar_lea.vmem %s122_s13, 128  ;;  %p159_p6 = scmp.lt.s32.totalorder %s122_s13, %s122_s13 }
  0x14   :  { %v50_v24 = vrot.slane %v49_v16, 2  ;;  %v56_v26 = vrot.slane %v55_v18, 2  ;;  %v62_v27 = vrot.slane %v61_v19, 2  ;;  %v79_v29 = vmax.f32 %v35_v10, %v78_v21  ;;  %p155_p5 = scmp.ne.s32.totalorder %s122_s13, %s154_s14  ;;  %p160_p7 = scmp.lt.s32.totalorder %s154_s14, %s154_s14 }
  0x15   :  { %v68_v28 = vrot.slane %v67_v20, 2  ;;  %v39_v30 = vmax.f32 %v37_v14, %v38_v22  ;;  %v45_v31 = vmax.f32 %v43_v15, %v44_v23  ;;  %v74_v33 = vrot.slane %v73_v25, 2 }
  0x16   :  { %v51_v32 = vmax.f32 %v49_v16, %v50_v24  ;;  %v57_v34 = vmax.f32 %v55_v18, %v56_v26  ;;  %v63_v35 = vmax.f32 %v61_v19, %v62_v27  ;;  %v80_v37 = vrot.slane %v79_v29, 2  ;;  %p161_p8 = por %p160_p7, %p159_p6 }
  0x17   :  { %v69_v36 = vmax.f32 %v67_v20, %v68_v28  ;;  %v40_v38 = vrot.slane %v39_v30, 1  ;;  %v46_v39 = vrot.slane %v45_v31, 1  ;;  %v75_v41 = vmax.f32 %v73_v25, %v74_v33 }
  0x18   :  { %v52_v40 = vrot.slane %v51_v32, 1  ;;  %v58_v42 = vrot.slane %v57_v34, 1  ;;  %v64_v43 = vrot.slane %v63_v35, 1  ;;  %v81_v45 = vmax.f32 %v79_v29, %v80_v37  ;;  %p162_p9 = pnand %p161_p8, %p155_p5 }
  0x19   :  { %v70_v44 = vrot.slane %v69_v36, 1  ;;  %v41_v46 = vmax.f32 %v39_v30, %v40_v38  ;;  %v47_v47 = vmax.f32 %v45_v31, %v46_v39  ;;  %v76_v49 = vrot.slane %v75_v41, 1 }
  0x1a   :  { %v53_v48 = vmax.f32 %v51_v32, %v52_v40  ;;  %v59_v50 = vmax.f32 %v57_v34, %v58_v42  ;;  %v65_v51 = vmax.f32 %v63_v35, %v64_v43  ;;  %v82_v52 = vrot.slane %v81_v45, 1 }
  0x1b   :  { %v71_v53 = vmax.f32 %v69_v36, %v70_v44  ;;  %v94_v54 = vsel %vm93_vm0, %v47_v47, %v41_v46  ;;  %vm99_vm3 = vcmask 1044484   ;;  %v77_v55 = vmax.f32 %v75_v41, %v76_v49 }
  0x1c   :  { %v96_v56 = vsel %vm95_vm1, %v53_v48, %v94_v54  ;;  %vm101_vm4 = vcmask 1045509   ;;  %v83_v57 = vmax.f32 %v81_v45, %v82_v52  ;;  %vm103_vm5 = vcmask 1046534  }
  0x1d   :  { %v98_v58 = vsel %vm97_vm2, %v59_v50, %v96_v56  ;;  %vm105_vm6 = vcmask 1047559  }
  0x1e   :  { %v100_v59 = vsel %vm99_vm3, %v65_v51, %v98_v58 }
  0x1f   :  { %v102_v60 = vsel %vm101_vm4, %v71_v53, %v100_v59 }
  0x20   :  { %v104_v61 = vsel %vm103_vm5, %v77_v55, %v102_v60 }
  0x21   :  { %v106_v62 = vsel %vm105_vm6, %v83_v57, %v104_v61 }
  0x22   :  { %114 = vst [vmem:[#allocation6] sm:$0xff] %v106_v62 }
  0x23   :  { %165 = shalt.err (!%p162_p9)
}
  0x24   :  { %124 = dma.vmem_to_hbm [thread:$0]  %s122_s13, 128, %s201_s1, [#allocation5]  }
  0x25   :  { %176 = dma.done.wait [#allocation5], 128  }
  0x26   :  { %177 = vsyncadd [#allocation5], 4294967168 }
  0x27   :  { %128 = vsyncpa [#allocation4], 1 }
  0x28   :  { %129 = vsyncpa [#allocation5], 1 }

</bundles_post_ra>
